<compile_context>
chip_gen: v7x
topology: tpu7x:2x2x1
jax: 0.10.0
libtpu: 0.0.40
codegen_flags: <defaults>
</compile_context>

<pallas_src>
import functools

import jax
import jax.numpy as jnp
from jax.experimental import pallas as pl
from jax.experimental.pallas import tpu as pltpu

_CLAMP_MIN = 1e-08
_CLAMP_MAX = 1e08


def _exp_act_kernel(x_ref, o_ref, *, compute_dtype):
    # exp on the EUP, clamp on the VPU; casts are no-ops when dtypes match.
    x = x_ref[...].astype(compute_dtype)
    y = jnp.exp(x)
    o_ref[...] = jnp.clip(y, _CLAMP_MIN, _CLAMP_MAX).astype(o_ref.dtype)


def _device_params():
    """Returns (target_block_bytes, tensorcores_per_chip, eup_has_bf16)."""
    # Conservative default (fits v5e's 16 MiB scoped-VMEM with 4x double-buffers).
    target, num_tc, bf16_eup = 2 * 1024 * 1024, 1, False
    try:
        kind = jax.devices()[0].device_kind.lower()
    except Exception:
        kind = ""
    if "v7" in kind or "7x" in kind:
        # 4 MiB blocks -> 16 MiB double-buffered, under v7x's 32 MiB scoped default.
        target, num_tc, bf16_eup = 4 * 1024 * 1024, 2, True
    elif "v6" in kind:
        target, num_tc, bf16_eup = 4 * 1024 * 1024, 1, True
    return target, num_tc, bf16_eup


def _round_up(v, m):
    return -(-v // m) * m


def _choose_block_rows(rows, bytes_per_row, sublane, target_bytes, num_tc):
    # Largest sublane-multiple row count whose block fits the byte budget.
    br = max(sublane, (target_bytes // max(bytes_per_row, 1)) // sublane * sublane)
    if num_tc > 1 and rows * bytes_per_row >= num_tc * 512 * 1024:
        # Megacore (v7x): give each TensorCore at least 2 pipelined grid steps.
        br = min(br, _round_up(pl.cdiv(rows, 2 * num_tc), sublane))
    if br >= rows:
        return rows  # single full block; no forced split on single-TC chips
    if num_tc > 1:
        steps = pl.cdiv(rows, br)
        if steps % 2:  # prefer an even step count so both cores get equal work
            br_even = _round_up(pl.cdiv(rows, steps + 1), sublane)
            if sublane <= br_even < rows:
                br = br_even
    return br


def _exp_act_2d(x2d, *, compute_dtype, target_bytes, num_tc, sublane):
    rows, lanes = x2d.shape
    dtype = x2d.dtype
    itemsize = dtype.itemsize
    n = rows * lanes

    br = _choose_block_rows(rows, lanes * itemsize, sublane, target_bytes, num_tc)
    grid = (pl.cdiv(rows, br),)

    return pl.pallas_call(
        functools.partial(_exp_act_kernel, compute_dtype=compute_dtype),
        out_shape=jax.ShapeDtypeStruct((rows, lanes), dtype),
        grid_spec=pltpu.PrefetchScalarGridSpec(
            num_scalar_prefetch=0,
            grid=grid,
            in_specs=[pl.BlockSpec((br, lanes), lambda i: (i, 0))],
            out_specs=pl.BlockSpec((br, lanes), lambda i: (i, 0)),
        ),
        compiler_params=pltpu.CompilerParams(
            dimension_semantics=("parallel",),
        ),
        cost_estimate=pl.CostEstimate(
            flops=2 * n, transcendentals=n, bytes_accessed=2 * n * itemsize),
    )(x2d)


def exp_act(x):
    """clamp(exp(x), 1e-8, 1e8) for any shape / float dtype."""
    shape, dtype = x.shape, x.dtype
    n = x.size
    if n == 0:
        return x

    itemsize = dtype.itemsize
    target_bytes, num_tc, bf16_eup = _device_params()
    sublane = max(8, 32 // itemsize)  # native sublane tile: f32->8, bf16->16, 8-bit->32
    compute_dtype = dtype if (dtype == jnp.bfloat16 and bf16_eup) else jnp.float32

    run = functools.partial(_exp_act_2d, compute_dtype=compute_dtype,
                            target_bytes=target_bytes, num_tc=num_tc, sublane=sublane)

    if n % 128 == 0:
        # Fast path: free reshape to a lane-dense slab; no pad, no tail slice.
        return run(x.reshape(n // 128, 128)).reshape(shape)

    lanes = shape[-1] if x.ndim >= 2 else n
    if lanes * itemsize <= target_bytes:
        # Ragged path: full (unaligned) last dim stays inside the block, leading
        # dims collapse into rows; HBM traffic stays at the 2*n roofline minimum.
        return run(x.reshape(n // lanes, lanes)).reshape(shape)

    # TODO(synk): pathological shapes (last dim not 128-aligned AND wider than a
    # block) still pay a pad + tail-slice round trip (~3x HBM traffic).
    pad = (-n) % 128
    x2d = jnp.pad(x.reshape(-1), (0, pad)).reshape(-1, 128)
    return run(x2d).reshape(-1)[:n].reshape(shape)


if __name__ == "__main__":
    key = jax.random.PRNGKey(0)
    # Small NCHW input consistent with the module's typical use.
    x = jax.random.normal(key, (2, 4, 16, 16), dtype=jnp.float32) * 4.0

    out = jax.block_until_ready(exp_act(x))
    ref = jnp.clip(jnp.exp(x), _CLAMP_MIN, _CLAMP_MAX)
    assert out.shape == x.shape and out.dtype == x.dtype
    assert jnp.allclose(out, ref, rtol=1e-6, atol=1e-6), "mismatch vs reference (f32)"

    # Lane-unaligned path — handled inside the kernel, no pad / slice round trip.
    x2 = jax.random.normal(jax.random.PRNGKey(1), (3, 5, 7), dtype=jnp.float32) * 3.0
    out2 = jax.block_until_ready(exp_act(x2))
    ref2 = jnp.clip(jnp.exp(x2), _CLAMP_MIN, _CLAMP_MAX)
    assert out2.shape == x2.shape and out2.dtype == x2.dtype
    assert jnp.allclose(out2, ref2, rtol=1e-6, atol=1e-6), "mismatch vs reference (ragged)"

    # bf16 path (native bf16 exp on v6e/v7x, f32 compute elsewhere).
    xb = x.astype(jnp.bfloat16)
    outb = jax.block_until_ready(exp_act(xb))
    refb = jnp.clip(jnp.exp(xb.astype(jnp.float32)), _CLAMP_MIN, _CLAMP_MAX).astype(jnp.bfloat16)
    assert outb.dtype == jnp.bfloat16
    assert jnp.allclose(outb.astype(jnp.float32), refb.astype(jnp.float32),
                        rtol=2e-2, atol=1e-6), "mismatch vs reference (bf16)"

    print("KERNEL_OK")
</pallas_src>

<mosaic_0001>
module attributes {stable_mosaic.version = 11 : i64} {
  func.func @_exp_act_kernel(%arg0: i32, %arg1: memref<16x128xf32, #tpu.memory_space<vmem>>, %arg2: memref<16x128xf32, #tpu.memory_space<vmem>>) attributes {dimension_semantics = [#tpu.dimension_semantics<parallel>], iteration_bounds = array<i64: 1>, scalar_prefetch = 0 : i64, scratch_operands = 0 : i64, tpu.core_type = #tpu.core_type<tc>, window_params = [{transform_indices = @transform_0, window_bounds = array<i64: 16, 128>}, {transform_indices = @transform_1, window_bounds = array<i64: 16, 128>}]} {
    %c0 = arith.constant 0 : index
    %c0_0 = arith.constant 0 : index
    %0 = vector.load %arg1[%c0, %c0_0] : memref<16x128xf32, #tpu.memory_space<vmem>>, vector<16x128xf32>
    %1 = math.exp %0 : vector<16x128xf32>
    %cst = arith.constant 9.99999993E-9 : f32
    %cst_1 = arith.constant 1.000000e+08 : f32
    %2 = vector.broadcast %cst : f32 to vector<16x128xf32>
    %3 = arith.maximumf %2, %1 : vector<16x128xf32>
    %4 = vector.broadcast %cst_1 : f32 to vector<16x128xf32>
    %5 = arith.minimumf %4, %3 : vector<16x128xf32>
    %c0_2 = arith.constant 0 : index
    %c0_3 = arith.constant 0 : index
    %6 = vector.load %arg2[%c0_2, %c0_3] : memref<16x128xf32, #tpu.memory_space<vmem>>, vector<16x128xf32>
    tpu.vector_store %arg2[%c0_2, %c0_3], %5 {strides = array<i32>} : memref<16x128xf32, #tpu.memory_space<vmem>>, vector<16x128xf32>,
    return
  }
  func.func @transform_0(%arg0: i32) -> (i32, i32) {
    %c0_i32 = arith.constant 0 : i32
    %c0_i32_0 = arith.constant 0 : i32
    return %arg0, %c0_i32 : i32, i32
  }
  func.func @transform_1(%arg0: i32) -> (i32, i32) {
    %c0_i32 = arith.constant 0 : i32
    %c0_i32_0 = arith.constant 0 : i32
    return %arg0, %c0_i32 : i32, i32
  }
}

</mosaic_0001>

<bundles_post_ra>
// kernel: tpu_custom_call.1
= control target key start
LH: loop header
LB: loop body
LE: loop exit
PB: predicated region body
PF: predicated region fallthrough
CT: control target
= control target key end

     0   :  { %6 = vsyncpa [#allocation3], 0  ;;  %s152_s0 = inlined_call_operand.hbm [shape: f32[16,128], index: 0, kind: input, shape index: {}]   ;;  %s153_s1 = inlined_call_operand.hbm [shape: f32[16,128], index: 1, kind: output, shape index: {}]  }
   0x1   :  { %7 = vsyncpa [#allocation4], 0  ;;  %s108_s6 = smov [#allocation2]   ;;  %s60_s10 = scalar_lea.hbm %s152_s0, 256 }
   0x2   :  { %s13_s7 = sshll.u32 %s108_s6, 4  ;;  %p61_p0 = scmp.ne.s32.totalorder %s152_s0, %s60_s10  ;;  %s14_s7 = int_to_ptr.vmem [resolvable:$true] %s13_s7 }
   0x3   :  { %p64_p1 = scmp.lt.u32.totalorder %s60_s10, %s152_s0 }
   0x5   :  { %p66_p2 = pnand %p64_p1, %p61_p0 }
   0x7   :  { %69 = shalt.err (!%p66_p2)
}
   0x8   :  { %s70_s15 = scalar_lea.vmem %s14_s7, 256  ;;  %p75_p4 = scmp.lt.s32.totalorder %s14_s7, %s14_s7 }
   0x9   :  { %p71_p3 = scmp.ne.s32.totalorder %s14_s7, %s70_s15  ;;  %p76_p5 = scmp.lt.s32.totalorder %s70_s15, %s70_s15 }
   0xb   :  { %p77_p6 = por %p76_p5, %p75_p4 }
   0xd   :  { %p78_p7 = pnand %p77_p6, %p71_p3 }
   0xf   :  { %81 = shalt.err (!%p78_p7)
}
  0x10   :  { %s109_s16 = smov 128   ;;  %s110_s17 = smov 8  }
  0x11   :  { %19 = dma.hbm_to_vmem [thread:$0]  %s152_s0, 256, %s14_s7, [#allocation3], %s109_s16, %s109_s16, %s110_s17  }
  0x12   :  { %104 = dma.done.wait [#allocation3], 256  }
  0x13   :  { %105 = vsyncadd [#allocation3], 4294967040  ;;  %v23_v0 = vld [vmem:[#allocation2] sm:$0xff]  ;;  %v24_v1 = vld [vmem:[#allocation2 + $0x8] sm:$0xff]  ;;  %s111_s20 = smov [#allocation5]  }
  0x14   :  { %v25_v2 = vmul.f32 1.442695, %v23_v0  ;;  %v27_v3 = vmul.f32 1.442695, %v24_v1  ;;  %s40_s21 = sshll.u32 %s111_s20, 4  ;;  %s41_s21 = int_to_ptr.vmem [resolvable:$true] %s40_s21 }
  0x15   :  { %s82_s0 = scalar_lea.vmem %s41_s21, 256  ;;  %p87_p9 = scmp.lt.s32.totalorder %s41_s21, %s41_s21 }
  0x16   :  { %56 = vpow2.f32 %v25_v2  ;;  %p83_p8 = scmp.ne.s32.totalorder %s41_s21, %s82_s0  ;;  %p88_p10 = scmp.lt.s32.totalorder %s82_s0, %s82_s0 }
  0x17   :  { %58 = vpow2.f32 %v27_v3 }
  0x18   :  { %p89_p11 = por %p88_p10, %p87_p9 }
  0x1a   :  { %p90_p12 = pnand %p89_p11, %p83_p8 }
  0x20   :  { %v57_v4 = vpop.eup %56 }
  0x21   :  { %v59_v5 = vpop.eup %58  ;;  %v29_v6 = vmax.f32 %v57_v4, 1e-08 }
  0x22   :  { %v30_v7 = vmax.f32 %v59_v5, 1e-08 }
  0x23   :  { %v31_v8 = vmin.f32 %v29_v6, 1e+08 }
  0x24   :  { %v32_v9 = vmin.f32 %v30_v7, 1e+08 }
  0x25   :  { %33 = vst [vmem:[#allocation5] sm:$0xff] %v31_v8 }
  0x26   :  { %34 = vst [vmem:[#allocation5 + $0x8] sm:$0xff] %v32_v9 }
  0x27   :  { %93 = shalt.err (!%p90_p12)
}
  0x28   :  { %s94_s24 = scalar_lea.hbm %s153_s1, 256 }
  0x29   :  { %p95_p13 = scmp.ne.s32.totalorder %s153_s1, %s94_s24  ;;  %p98_p0 = scmp.lt.u32.totalorder %s94_s24, %s153_s1 }
  0x2b   :  { %p100_p1 = pnand %p98_p0, %p95_p13 }
  0x2d   :  { %103 = shalt.err (!%p100_p1)
}
  0x2e   :  { %46 = dma.vmem_to_hbm [thread:$0]  %s41_s21, 256, %s153_s1, [#allocation4], %s109_s16, %s109_s16, %s110_s17  }
  0x2f   :  { %106 = dma.done.wait [#allocation4], 256  }
  0x30   :  { %107 = vsyncadd [#allocation4], 4294967040 }
  0x31   :  { %50 = vsyncpa [#allocation3], 1 }
  0x32   :  { %51 = vsyncpa [#allocation4], 1 }

</bundles_post_ra>
